<compile_context>
chip_gen: v7x
topology: tpu7x:2x2x1
jax: 0.10.0
libtpu: 0.0.40
codegen_flags: <defaults>
</compile_context>

<pallas_src>
import math

import jax
import jax.numpy as jnp
import numpy as np
from jax import lax
from jax.experimental import pallas as pl
from jax.experimental.pallas import tpu as pltpu


def _loss_kernel(z_ref, zm_ref, zs_ref, d_ref, dt_ref, pe_ref,
                 ilen_ref, olen_ref, out_ref, acc_ref):
    li = pl.program_id(1)

    @pl.when(li == 0)
    def _init():
        acc_ref[...] = jnp.zeros_like(acc_ref)

    # Fused flow (MLE) term, accumulated elementwise (VPU-only per step):
    #   zs + 0.5 * exp(-2*zs) * (z - zm)^2
    z = z_ref[...].astype(jnp.float32)
    zm = zm_ref[...].astype(jnp.float32)
    zs = zs_ref[...].astype(jnp.float32)
    diff = z - zm
    acc_ref[...] += zs + 0.5 * jnp.exp(-2.0 * zs) * (diff * diff)

    @pl.when(li == pl.num_programs(1) - 1)
    def _finalize():
        # Single cross-lane reduction of the accumulated flow term.
        pz_partial = jnp.sum(acc_ref[...])

        # Duration predictor numerator: masked sum of (d_out - log(d + 1))^2
        # over the input mask (t < ilens[b]).  Small resident tensors; this
        # runs once per parallel block and row 0 is used by the host glue.
        d = d_ref[...].astype(jnp.float32)
        dt = dt_ref[...].astype(jnp.float32)
        Bd, Td = d_ref.shape
        t_idx = lax.broadcasted_iota(jnp.int32, (Bd, Td), 1)
        in_mask = (t_idx < ilen_ref[...]).astype(jnp.float32)
        dt_safe = jnp.where(in_mask > 0.0, dt, 0.0)       # keep log finite on pads
        d_err = d - jnp.log(dt_safe + 1.0)
        dur_sq = jnp.sum(in_mask * d_err * d_err)

        # Pitch / energy masked squared-error numerators from the stacked
        # (4, B, Lmax) resident input: [p_out, p_tgt, e_out, e_tgt].
        Bp, Lp = pe_ref.shape[1], pe_ref.shape[2]
        l_idx = lax.broadcasted_iota(jnp.int32, (Bp, Lp), 1)
        out_mask = (l_idx < olen_ref[...]).astype(jnp.float32)
        p_err = pe_ref[0] - pe_ref[1]
        e_err = pe_ref[2] - pe_ref[3]
        pitch_sq = jnp.sum(out_mask * p_err * p_err)
        energy_sq = jnp.sum(out_mask * e_err * e_err)

        # Lane-dense output row: [pz, dur_sq, pitch_sq, energy_sq, 0, ...].
        lane = lax.broadcasted_iota(jnp.int32, (1, 8, 128), 2)
        out_ref[...] = (jnp.where(lane == 0, pz_partial, 0.0)
                        + jnp.where(lane == 1, dur_sq, 0.0)
                        + jnp.where(lane == 2, pitch_sq, 0.0)
                        + jnp.where(lane == 3, energy_sq, 0.0))


def _pick_l_tiling(B, L, D, l_block=None, budget_bytes=1 << 20):
    """Pick an Lmax tile (multiple of 8 dividing L, ~budget_bytes f32 per block)
    and split the resulting block count into (parallel, inner) grid axes."""
    if l_block is None:
        cap = max(8, budget_bytes // (4 * B * D))
        cap = min(cap, L)
        tl = None
        c = (cap // 8) * 8
        while c >= 8:
            if L % c == 0:
                tl = c
                break
            c -= 8
        if tl is None:
            tl = L          # L not tileable under the (8,128) rule -> single block
    else:
        tl = int(l_block)
        if L % tl != 0 or (tl % 8 != 0 and tl != L):
            raise ValueError(
                f"l_block={tl} must divide Lmax={L} and be a multiple of 8 (or equal Lmax)")
    n_blocks = L // tl
    n_par = 2 if (n_blocks >= 2 and n_blocks % 2 == 0) else 1   # v7x: 2 TensorCores
    n_inner = n_blocks // n_par
    return tl, n_par, n_inner


def fast_glow_loss(z_outs, z_mean_outs, z_std_outs, d_outs, p_outs, e_outs,
                   ds, ps, es, ilens, olens, logdet, *, l_block=None):
    """use_masking=True, use_weighted_masking=False path of FastGlowLoss.forward."""
    B, L, D = z_outs.shape
    T = d_outs.shape[1]

    tl, n_par, n_inner = _pick_l_tiling(B, L, D, l_block)

    # Small-tensor glue (negligible traffic): squeeze the (B,L,1) pitch/energy
    # tensors and stack preds+targets into one (4,B,L) f32 array (single DMA).
    pe = jnp.stack([
        jnp.squeeze(p_outs, -1).astype(jnp.float32),
        jnp.squeeze(ps, -1).astype(jnp.float32),
        jnp.squeeze(e_outs, -1).astype(jnp.float32),
        jnp.squeeze(es, -1).astype(jnp.float32),
    ], axis=0)
    ilen_i = ilens.astype(jnp.int32).reshape(B, 1)
    olen_i = olens.astype(jnp.int32).reshape(B, 1)

    z_spec = pl.BlockSpec((B, tl, D), lambda i, li: (0, i * n_inner + li, 0))

    def resident(shape):
        nd = len(shape)
        return pl.BlockSpec(shape, lambda i, li: (0,) * nd)

    sums = pl.pallas_call(
        _loss_kernel,
        out_shape=jax.ShapeDtypeStruct((n_par, 8, 128), jnp.float32),
        grid_spec=pltpu.PrefetchScalarGridSpec(
            num_scalar_prefetch=0,
            grid=(n_par, n_inner),
            in_specs=[
                z_spec, z_spec, z_spec,              # z, z_mean, z_std (native dtype)
                resident((B, T)), resident((B, T)),  # d_outs, ds
                resident((4, B, L)),                 # stacked pitch/energy preds+targets
                resident((B, 1)), resident((B, 1)),  # ilens, olens (int32)
            ],
            out_specs=pl.BlockSpec((1, 8, 128), lambda i, li: (i, 0, 0)),
            scratch_shapes=[pltpu.VMEM((B, tl, D), jnp.float32)],
        ),
        compiler_params=pltpu.CompilerParams(
            dimension_semantics=("parallel", "arbitrary")),
    )(z_outs, z_mean_outs, z_std_outs, d_outs, ds, pe, ilen_i, olen_i)

    res = sums[:, 0, :]                        # (n_par, 128)
    pz = jnp.sum(res[:, 0])                    # flow partial sums across parallel blocks
    dur_sq = res[0, 1]
    pitch_sq = res[0, 2]
    energy_sq = res[0, 3]

    # Mask element counts (== sum of the boolean masks, robust to lens > max).
    n_in = jnp.sum(jnp.minimum(ilens, T)).astype(jnp.float32)
    n_out = jnp.sum(jnp.minimum(olens, L)).astype(jnp.float32)
    olens_sum = jnp.sum(olens).astype(jnp.float32)   # reference uses raw sum(olens) here
    constant_factor = 0.5 * math.log(2.0 * math.pi)

    log_mle = constant_factor + (pz - jnp.sum(logdet.astype(jnp.float32))) / (olens_sum * D)
    duration_loss = dur_sq / n_in
    pitch_loss = pitch_sq / n_out
    energy_loss = energy_sq / n_out
    return log_mle, duration_loss, pitch_loss, energy_loss


def _reference(z, zm, zs, d_outs, p_outs, e_outs, ds, ps, es, ilens, olens, logdet):
    """Pure-JAX reference mirroring the PyTorch module (use_masking=True)."""
    B, L, D = z.shape
    T = d_outs.shape[1]
    in_mask = (jnp.arange(T)[None, :] < ilens[:, None]).astype(jnp.float32)
    out_mask = (jnp.arange(L)[None, :] < olens[:, None]).astype(jnp.float32)

    zf, zmf, zsf = (x.astype(jnp.float32) for x in (z, zm, zs))
    pz = jnp.sum(zsf) + 0.5 * jnp.sum(jnp.exp(-2.0 * zsf) * (zf - zmf) ** 2)
    log_mle = 0.5 * math.log(2 * math.pi) + (pz - jnp.sum(logdet)) / (jnp.sum(olens) * D)

    tgt = jnp.log(jnp.where(in_mask > 0, ds.astype(jnp.float32), 0.0) + 1.0)
    dur = jnp.sum(in_mask * (d_outs.astype(jnp.float32) - tgt) ** 2) / jnp.sum(in_mask)
    pit = jnp.sum(out_mask * (p_outs[..., 0] - ps[..., 0]) ** 2) / jnp.sum(out_mask)
    ene = jnp.sum(out_mask * (e_outs[..., 0] - es[..., 0]) ** 2) / jnp.sum(out_mask)
    return log_mle, dur, pit, ene


if __name__ == "__main__":
    key = jax.random.PRNGKey(0)
    B, L, D, T = 2, 256, 64, 32    # (batch, Lmax, odim, Tmax)
    ks = jax.random.split(key, 10)

    z_outs = jax.random.normal(ks[0], (B, L, D), jnp.float32)
    z_mean_outs = jax.random.normal(ks[1], (B, L, D), jnp.float32)
    z_std_outs = 0.1 * jax.random.normal(ks[2], (B, L, D), jnp.float32)
    d_outs = jax.random.normal(ks[3], (B, T), jnp.float32)
    ds = jax.random.randint(ks[4], (B, T), 0, 5).astype(jnp.int32)
    p_outs = jax.random.normal(ks[5], (B, L, 1), jnp.float32)
    e_outs = jax.random.normal(ks[6], (B, L, 1), jnp.float32)
    ps = jax.random.normal(ks[7], (B, L, 1), jnp.float32)
    es = jax.random.normal(ks[8], (B, L, 1), jnp.float32)
    logdet = jax.random.normal(ks[9], (B,), jnp.float32)
    ilens = jnp.array([T, T - 7], jnp.int32)
    olens = jnp.array([L, L - 37], jnp.int32)

    # f32 inputs with explicit multi-block tiling (4 L-blocks -> 2 parallel x 2 inner).
    outs = fast_glow_loss(z_outs, z_mean_outs, z_std_outs, d_outs, p_outs, e_outs,
                          ds, ps, es, ilens, olens, logdet, l_block=64)
    outs = jax.block_until_ready(outs)
    refs = _reference(z_outs, z_mean_outs, z_std_outs, d_outs, p_outs, e_outs,
                      ds, ps, es, ilens, olens, logdet)
    for got, want in zip(outs, refs):
        np.testing.assert_allclose(np.asarray(got), np.asarray(want), rtol=1e-4, atol=1e-5)

    # Native-bf16 path for the three big flow tensors (no wrapper-side f32 copies),
    # auto tiling.  Reference computed on the bf16-rounded values.
    z_bf = z_outs.astype(jnp.bfloat16)
    zm_bf = z_mean_outs.astype(jnp.bfloat16)
    zs_bf = z_std_outs.astype(jnp.bfloat16)
    outs_bf = fast_glow_loss(z_bf, zm_bf, zs_bf, d_outs, p_outs, e_outs,
                             ds, ps, es, ilens, olens, logdet)
    outs_bf = jax.block_until_ready(outs_bf)
    refs_bf = _reference(z_bf.astype(jnp.float32), zm_bf.astype(jnp.float32),
                         zs_bf.astype(jnp.float32), d_outs, p_outs, e_outs,
                         ds, ps, es, ilens, olens, logdet)
    for got, want in zip(outs_bf, refs_bf):
        np.testing.assert_allclose(np.asarray(got), np.asarray(want), rtol=1e-3, atol=1e-4)

    print("KERNEL_OK")
</pallas_src>

<mosaic_0001>
module attributes {stable_mosaic.version = 11 : i64} {
  func.func @_loss_kernel(%arg0: i32, %arg1: i32, %arg2: memref<2x64x64xf32, #tpu.memory_space<vmem>>, %arg3: memref<2x64x64xf32, #tpu.memory_space<vmem>>, %arg4: memref<2x64x64xf32, #tpu.memory_space<vmem>>, %arg5: memref<2x32xf32, #tpu.memory_space<vmem>>, %arg6: memref<2x32xi32, #tpu.memory_space<vmem>>, %arg7: memref<4x2x256xf32, #tpu.memory_space<vmem>>, %arg8: memref<2x1xi32, #tpu.memory_space<vmem>>, %arg9: memref<2x1xi32, #tpu.memory_space<vmem>>, %arg10: memref<1x8x128xf32, #tpu.memory_space<vmem>>, %arg11: memref<2x64x64xf32, #tpu.memory_space<vmem>>) attributes {dimension_semantics = [#tpu.dimension_semantics<parallel>, #tpu.dimension_semantics<arbitrary>], iteration_bounds = array<i64: 2, 2>, scalar_prefetch = 0 : i64, scratch_operands = 1 : i64, tpu.core_type = #tpu.core_type<tc>, window_params = [{transform_indices = @transform_0, window_bounds = array<i64: 2, 64, 64>}, {transform_indices = @transform_1, window_bounds = array<i64: 2, 64, 64>}, {transform_indices = @transform_2, window_bounds = array<i64: 2, 64, 64>}, {pipeline_mode = #tpu.pipeline_mode<synchronous>, transform_indices = @transform_3, window_bounds = array<i64: 2, 32>}, {pipeline_mode = #tpu.pipeline_mode<synchronous>, transform_indices = @transform_4, window_bounds = array<i64: 2, 32>}, {pipeline_mode = #tpu.pipeline_mode<synchronous>, transform_indices = @transform_5, window_bounds = array<i64: 4, 2, 256>}, {pipeline_mode = #tpu.pipeline_mode<synchronous>, transform_indices = @transform_6, window_bounds = array<i64: 2, 1>}, {pipeline_mode = #tpu.pipeline_mode<synchronous>, transform_indices = @transform_7, window_bounds = array<i64: 2, 1>}, {transform_indices = @transform_8, window_bounds = array<i64: 1, 8, 128>}]} {
    %c0_i32 = arith.constant 0 : i32
    %0 = arith.cmpi eq, %arg1, %c0_i32 : i32
    %1 = arith.extui %0 : i1 to i32
    %c0_i32_0 = arith.constant 0 : i32
    %2 = arith.cmpi ne, %1, %c0_i32_0 : i32
    scf.if %2 {
      %cst_17 = arith.constant 0.000000e+00 : f32
      %21 = vector.broadcast %cst_17 : f32 to vector<2x64x64xf32>
      %c0_18 = arith.constant 0 : index
      %c0_19 = arith.constant 0 : index
      %c0_20 = arith.constant 0 : index
      %22 = vector.load %arg11[%c0_18, %c0_19, %c0_20] : memref<2x64x64xf32, #tpu.memory_space<vmem>>, vector<2x64x64xf32>
      tpu.vector_store %arg11[%c0_18, %c0_19, %c0_20], %21 {strides = array<i32>} : memref<2x64x64xf32, #tpu.memory_space<vmem>>, vector<2x64x64xf32>,
    } else {
    }
    %c0 = arith.constant 0 : index
    %c0_1 = arith.constant 0 : index
    %c0_2 = arith.constant 0 : index
    %3 = vector.load %arg2[%c0, %c0_1, %c0_2] : memref<2x64x64xf32, #tpu.memory_space<vmem>>, vector<2x64x64xf32>
    %c0_3 = arith.constant 0 : index
    %c0_4 = arith.constant 0 : index
    %c0_5 = arith.constant 0 : index
    %4 = vector.load %arg3[%c0_3, %c0_4, %c0_5] : memref<2x64x64xf32, #tpu.memory_space<vmem>>, vector<2x64x64xf32>
    %c0_6 = arith.constant 0 : index
    %c0_7 = arith.constant 0 : index
    %c0_8 = arith.constant 0 : index
    %5 = vector.load %arg4[%c0_6, %c0_7, %c0_8] : memref<2x64x64xf32, #tpu.memory_space<vmem>>, vector<2x64x64xf32>
    %6 = arith.subf %3, %4 : vector<2x64x64xf32>
    %c0_9 = arith.constant 0 : index
    %c0_10 = arith.constant 0 : index
    %c0_11 = arith.constant 0 : index
    %7 = vector.load %arg11[%c0_9, %c0_10, %c0_11] : memref<2x64x64xf32, #tpu.memory_space<vmem>>, vector<2x64x64xf32>
    %cst = arith.constant -2.000000e+00 : f32
    %8 = vector.broadcast %cst : f32 to vector<2x64x64xf32>
    %9 = arith.mulf %8, %5 : vector<2x64x64xf32>
    %10 = math.exp %9 : vector<2x64x64xf32>
    %cst_12 = arith.constant 5.000000e-01 : f32
    %11 = vector.broadcast %cst_12 : f32 to vector<2x64x64xf32>
    %12 = arith.mulf %11, %10 : vector<2x64x64xf32>
    %13 = arith.mulf %6, %6 : vector<2x64x64xf32>
    %14 = arith.mulf %12, %13 : vector<2x64x64xf32>
    %15 = arith.addf %5, %14 : vector<2x64x64xf32>
    %16 = arith.addf %7, %15 : vector<2x64x64xf32>
    %c0_13 = arith.constant 0 : index
    %c0_14 = arith.constant 0 : index
    %c0_15 = arith.constant 0 : index
    %17 = vector.load %arg11[%c0_13, %c0_14, %c0_15] : memref<2x64x64xf32, #tpu.memory_space<vmem>>, vector<2x64x64xf32>
    tpu.vector_store %arg11[%c0_13, %c0_14, %c0_15], %16 {strides = array<i32>} : memref<2x64x64xf32, #tpu.memory_space<vmem>>, vector<2x64x64xf32>,
    %c1_i32 = arith.constant 1 : i32
    %18 = arith.cmpi eq, %arg1, %c1_i32 : i32
    %19 = arith.extui %18 : i1 to i32
    %c0_i32_16 = arith.constant 0 : i32
    %20 = arith.cmpi ne, %19, %c0_i32_16 : i32
    scf.if %20 {
      %c0_17 = arith.constant 0 : index
      %c0_18 = arith.constant 0 : index
      %c0_19 = arith.constant 0 : index
      %21 = vector.load %arg11[%c0_17, %c0_18, %c0_19] : memref<2x64x64xf32, #tpu.memory_space<vmem>>, vector<2x64x64xf32>
      %22 = vector.shape_cast %21 : vector<2x64x64xf32> to vector<1x2x64x64xf32>
      %cst_20 = arith.constant dense<0.000000e+00> : vector<1xf32>
      %23 = vector.multi_reduction <add>, %22, %cst_20 [1, 2, 3] : vector<1x2x64x64xf32> to vector<1xf32>
      %24 = vector.shape_cast %23 : vector<1xf32> to vector<1x1x1x1xf32>
      %25 = vector.extract %24[0, 0, 0, 0] : f32 from vector<1x1x1x1xf32>
      %c0_21 = arith.constant 0 : index
      %c0_22 = arith.constant 0 : index
      %26 = vector.load %arg5[%c0_21, %c0_22] : memref<2x32xf32, #tpu.memory_space<vmem>>, vector<2x32xf32>
      %c0_23 = arith.constant 0 : index
      %c0_24 = arith.constant 0 : index
      %27 = vector.load %arg6[%c0_23, %c0_24] : memref<2x32xi32, #tpu.memory_space<vmem>>, vector<2x32xi32>
      %28 = arith.sitofp %27 : vector<2x32xi32> to vector<2x32xf32>
      %29 = tpu.iota {dimensions = array<i32: 1>} : vector<2x32xi32>
      %c0_25 = arith.constant 0 : index
      %c0_26 = arith.constant 0 : index
      %30 = vector.load %arg8[%c0_25, %c0_26] : memref<2x1xi32, #tpu.memory_space<vmem>>, vector<2x1xi32>
      %31 = vector.broadcast %30 : vector<2x1xi32> to vector<2x32xi32>
      %32 = arith.cmpi slt, %29, %31 : vector<2x32xi32>
      %33 = arith.extui %32 : vector<2x32xi1> to vector<2x32xi32>
      %34 = arith.sitofp %33 : vector<2x32xi32> to vector<2x32xf32>
      %cst_27 = arith.constant 0.000000e+00 : f32
      %35 = vector.broadcast %cst_27 : f32 to vector<2x32xf32>
      %36 = arith.cmpf ogt, %34, %35 : vector<2x32xf32>
      %cst_28 = arith.constant 0.000000e+00 : f32
      %37 = vector.broadcast %cst_28 : f32 to vector<2x32xf32>
      %38 = arith.select %36, %28, %37 : vector<2x32xi1>, vector<2x32xf32>
      %cst_29 = arith.constant 1.000000e+00 : f32
      %39 = vector.broadcast %cst_29 : f32 to vector<2x32xf32>
      %40 = arith.addf %38, %39 : vector<2x32xf32>
      %41 = math.log %40 : vector<2x32xf32>
      %42 = arith.subf %26, %41 : vector<2x32xf32>
      %43 = arith.mulf %34, %42 : vector<2x32xf32>
      %44 = arith.mulf %43, %42 : vector<2x32xf32>
      %45 = vector.shape_cast %44 : vector<2x32xf32> to vector<1x2x32xf32>
      %cst_30 = arith.constant dense<0.000000e+00> : vector<1xf32>
      %46 = vector.multi_reduction <add>, %45, %cst_30 [1, 2] : vector<1x2x32xf32> to vector<1xf32>
      %47 = vector.shape_cast %46 : vector<1xf32> to vector<1x1x1xf32>
      %48 = vector.extract %47[0, 0, 0] : f32 from vector<1x1x1xf32>
      %49 = tpu.iota {dimensions = array<i32: 1>} : vector<2x256xi32>
      %c0_31 = arith.constant 0 : index
      %c0_32 = arith.constant 0 : index
      %50 = vector.load %arg9[%c0_31, %c0_32] : memref<2x1xi32, #tpu.memory_space<vmem>>, vector<2x1xi32>
      %51 = vector.broadcast %50 : vector<2x1xi32> to vector<2x256xi32>
      %52 = arith.cmpi slt, %49, %51 : vector<2x256xi32>
      %53 = arith.extui %52 : vector<2x256xi1> to vector<2x256xi32>
      %54 = arith.sitofp %53 : vector<2x256xi32> to vector<2x256xf32>
      %c0_33 = arith.constant 0 : index
      %c0_34 = arith.constant 0 : index
      %c0_35 = arith.constant 0 : index
      %55 = vector.load %arg7[%c0_33, %c0_34, %c0_35] : memref<4x2x256xf32, #tpu.memory_space<vmem>>, vector<1x2x256xf32>
      %56 = vector.shape_cast %55 : vector<1x2x256xf32> to vector<2x256xf32>
      %c1 = arith.constant 1 : index
      %c0_36 = arith.constant 0 : index
      %c0_37 = arith.constant 0 : index
      %57 = vector.load %arg7[%c1, %c0_36, %c0_37] : memref<4x2x256xf32, #tpu.memory_space<vmem>>, vector<1x2x256xf32>
      %58 = vector.shape_cast %57 : vector<1x2x256xf32> to vector<2x256xf32>
      %59 = arith.subf %56, %58 : vector<2x256xf32>
      %c2 = arith.constant 2 : index
      %c0_38 = arith.constant 0 : index
      %c0_39 = arith.constant 0 : index
      %60 = vector.load %arg7[%c2, %c0_38, %c0_39] : memref<4x2x256xf32, #tpu.memory_space<vmem>>, vector<1x2x256xf32>
      %61 = vector.shape_cast %60 : vector<1x2x256xf32> to vector<2x256xf32>
      %c3 = arith.constant 3 : index
      %c0_40 = arith.constant 0 : index
      %c0_41 = arith.constant 0 : index
      %62 = vector.load %arg7[%c3, %c0_40, %c0_41] : memref<4x2x256xf32, #tpu.memory_space<vmem>>, vector<1x2x256xf32>
      %63 = vector.shape_cast %62 : vector<1x2x256xf32> to vector<2x256xf32>
      %64 = arith.subf %61, %63 : vector<2x256xf32>
      %65 = arith.mulf %54, %59 : vector<2x256xf32>
      %66 = arith.mulf %65, %59 : vector<2x256xf32>
      %67 = vector.shape_cast %66 : vector<2x256xf32> to vector<1x2x256xf32>
      %cst_42 = arith.constant dense<0.000000e+00> : vector<1xf32>
      %68 = vector.multi_reduction <add>, %67, %cst_42 [1, 2] : vector<1x2x256xf32> to vector<1xf32>
      %69 = vector.shape_cast %68 : vector<1xf32> to vector<1x1x1xf32>
      %70 = vector.extract %69[0, 0, 0] : f32 from vector<1x1x1xf32>
      %71 = arith.mulf %54, %64 : vector<2x256xf32>
      %72 = arith.mulf %71, %64 : vector<2x256xf32>
      %73 = vector.shape_cast %72 : vector<2x256xf32> to vector<1x2x256xf32>
      %cst_43 = arith.constant dense<0.000000e+00> : vector<1xf32>
      %74 = vector.multi_reduction <add>, %73, %cst_43 [1, 2] : vector<1x2x256xf32> to vector<1xf32>
      %75 = vector.shape_cast %74 : vector<1xf32> to vector<1x1x1xf32>
      %76 = vector.extract %75[0, 0, 0] : f32 from vector<1x1x1xf32>
      %77 = tpu.iota {dimensions = array<i32: 2>} : vector<1x8x128xi32>
      %c0_i32_44 = arith.constant 0 : i32
      %78 = vector.broadcast %c0_i32_44 : i32 to vector<1x8x128xi32>
      %79 = arith.cmpi eq, %77, %78 : vector<1x8x128xi32>
      %cst_45 = arith.constant 0.000000e+00 : f32
      %80 = vector.broadcast %25 : f32 to vector<1x8x128xf32>
      %81 = vector.broadcast %cst_45 : f32 to vector<1x8x128xf32>
      %82 = arith.select %79, %80, %81 : vector<1x8x128xi1>, vector<1x8x128xf32>
      %c1_i32_46 = arith.constant 1 : i32
      %83 = vector.broadcast %c1_i32_46 : i32 to vector<1x8x128xi32>
      %84 = arith.cmpi eq, %77, %83 : vector<1x8x128xi32>
      %cst_47 = arith.constant 0.000000e+00 : f32
      %85 = vector.broadcast %48 : f32 to vector<1x8x128xf32>
      %86 = vector.broadcast %cst_47 : f32 to vector<1x8x128xf32>
      %87 = arith.select %84, %85, %86 : vector<1x8x128xi1>, vector<1x8x128xf32>
      %88 = arith.addf %82, %87 : vector<1x8x128xf32>
      %c2_i32 = arith.constant 2 : i32
      %89 = vector.broadcast %c2_i32 : i32 to vector<1x8x128xi32>
      %90 = arith.cmpi eq, %77, %89 : vector<1x8x128xi32>
      %cst_48 = arith.constant 0.000000e+00 : f32
      %91 = vector.broadcast %70 : f32 to vector<1x8x128xf32>
      %92 = vector.broadcast %cst_48 : f32 to vector<1x8x128xf32>
      %93 = arith.select %90, %91, %92 : vector<1x8x128xi1>, vector<1x8x128xf32>
      %94 = arith.addf %88, %93 : vector<1x8x128xf32>
      %c3_i32 = arith.constant 3 : i32
      %95 = vector.broadcast %c3_i32 : i32 to vector<1x8x128xi32>
      %96 = arith.cmpi eq, %77, %95 : vector<1x8x128xi32>
      %cst_49 = arith.constant 0.000000e+00 : f32
      %97 = vector.broadcast %76 : f32 to vector<1x8x128xf32>
      %98 = vector.broadcast %cst_49 : f32 to vector<1x8x128xf32>
      %99 = arith.select %96, %97, %98 : vector<1x8x128xi1>, vector<1x8x128xf32>
      %100 = arith.addf %94, %99 : vector<1x8x128xf32>
      %c0_50 = arith.constant 0 : index
      %c0_51 = arith.constant 0 : index
      %c0_52 = arith.constant 0 : index
      %101 = vector.load %arg10[%c0_50, %c0_51, %c0_52] : memref<1x8x128xf32, #tpu.memory_space<vmem>>, vector<1x8x128xf32>
      tpu.vector_store %arg10[%c0_50, %c0_51, %c0_52], %100 {strides = array<i32>} : memref<1x8x128xf32, #tpu.memory_space<vmem>>, vector<1x8x128xf32>,
    } else {
    }
    return
  }
  func.func @transform_0(%arg0: i32, %arg1: i32) -> (i32, i32, i32) {
    %c2_i32 = arith.constant 2 : i32
    %0 = arith.muli %arg0, %c2_i32 : i32
    %1 = arith.addi %0, %arg1 : i32
    %c0_i32 = arith.constant 0 : i32
    %c0_i32_0 = arith.constant 0 : i32
    %c0_i32_1 = arith.constant 0 : i32
    return %c0_i32, %1, %c0_i32_0 : i32, i32, i32
  }
  func.func @transform_1(%arg0: i32, %arg1: i32) -> (i32, i32, i32) {
    %c2_i32 = arith.constant 2 : i32
    %0 = arith.muli %arg0, %c2_i32 : i32
    %1 = arith.addi %0, %arg1 : i32
    %c0_i32 = arith.constant 0 : i32
    %c0_i32_0 = arith.constant 0 : i32
    %c0_i32_1 = arith.constant 0 : i32
    return %c0_i32, %1, %c0_i32_0 : i32, i32, i32
  }
  func.func @transform_2(%arg0: i32, %arg1: i32) -> (i32, i32, i32) {
    %c2_i32 = arith.constant 2 : i32
    %0 = arith.muli %arg0, %c2_i32 : i32
    %1 = arith.addi %0, %arg1 : i32
    %c0_i32 = arith.constant 0 : i32
    %c0_i32_0 = arith.constant 0 : i32
    %c0_i32_1 = arith.constant 0 : i32
    return %c0_i32, %1, %c0_i32_0 : i32, i32, i32
  }
  func.func @transform_3(%arg0: i32, %arg1: i32) -> (i32, i32) {
    %c0_i32 = arith.constant 0 : i32
    %c0_i32_0 = arith.constant 0 : i32
    %c0_i32_1 = arith.constant 0 : i32
    return %c0_i32, %c0_i32_0 : i32, i32
  }
  func.func @transform_4(%arg0: i32, %arg1: i32) -> (i32, i32) {
    %c0_i32 = arith.constant 0 : i32
    %c0_i32_0 = arith.constant 0 : i32
    %c0_i32_1 = arith.constant 0 : i32
    return %c0_i32, %c0_i32_0 : i32, i32
  }
  func.func @transform_5(%arg0: i32, %arg1: i32) -> (i32, i32, i32) {
    %c0_i32 = arith.constant 0 : i32
    %c0_i32_0 = arith.constant 0 : i32
    %c0_i32_1 = arith.constant 0 : i32
    %c0_i32_2 = arith.constant 0 : i32
    return %c0_i32, %c0_i32_0, %c0_i32_1 : i32, i32, i32
  }
  func.func @transform_6(%arg0: i32, %arg1: i32) -> (i32, i32) {
    %c0_i32 = arith.constant 0 : i32
    %c0_i32_0 = arith.constant 0 : i32
    %c0_i32_1 = arith.constant 0 : i32
    return %c0_i32, %c0_i32_0 : i32, i32
  }
  func.func @transform_7(%arg0: i32, %arg1: i32) -> (i32, i32) {
    %c0_i32 = arith.constant 0 : i32
    %c0_i32_0 = arith.constant 0 : i32
    %c0_i32_1 = arith.constant 0 : i32
    return %c0_i32, %c0_i32_0 : i32, i32
  }
  func.func @transform_8(%arg0: i32, %arg1: i32) -> (i32, i32, i32) {
    %c0_i32 = arith.constant 0 : i32
    %c0_i32_0 = arith.constant 0 : i32
    %c0_i32_1 = arith.constant 0 : i32
    return %arg0, %c0_i32, %c0_i32_0 : i32, i32, i32
  }
}

</mosaic_0001>

<bundles_post_ra>
// kernel: tpu_custom_call.1
= control target key start
LH: loop header
LB: loop body
LE: loop exit
PB: predicated region body
PF: predicated region fallthrough
CT: control target
= control target key end

     0   :  { %s2041_s0 = inlined_call_operand.vmem [shape: f32[2,256,64], index: 0, kind: input, shape index: {}]   ;;  %s2042_s1 = inlined_call_operand.vmem [shape: f32[2,256,64], index: 1, kind: input, shape index: {}]   ;;  %s2043_s2 = inlined_call_operand.vmem [shape: f32[2,256,64], index: 2, kind: input, shape index: {}]   ;;  %s2044_s3 = inlined_call_operand.vmem [shape: f32[2,32], index: 3, kind: input, shape index: {}]   ;;  %s2045_s4 = inlined_call_operand.vmem [shape: s32[2,32], index: 4, kind: input, shape index: {}]   ;;  %s2046_s5 = inlined_call_operand.vmem [shape: f32[4,2,256], index: 5, kind: input, shape index: {}]   ;;  %s2047_s6 = inlined_call_operand.vmem [shape: s32[2,1], index: 6, kind: input, shape index: {}]   ;;  %s2048_s7 = inlined_call_operand.vmem [shape: s32[2,1], index: 7, kind: input, shape index: {}]   ;;  %s2049_s8 = inlined_call_operand.hbm [shape: f32[2,8,128], index: 8, kind: output, shape index: {}]  }
   0x1   :  { %2052 = sst [smem:[#allocation11_spill]] %s2041_s0 }
   0x2   :  { %2053 = sst [smem:[#allocation12_spill]] %s2042_s1 }
   0x3   :  { %2054 = sst [smem:[#allocation13_spill]] %s2043_s2 }
   0x4   :  { %2055 = sst [smem:[#allocation14_spill]] %s2044_s3 }
   0x5   :  { %2056 = sst [smem:[#allocation15_spill]] %s2049_s8 }
   0x6   :  { %13 = vsyncpa [#allocation7], 0 }
   0x7   :  { %15 = vsyncpa [#allocation7 + $0x1], 0  ;;  %s1566_s27 = smov 0   ;;  %s1568_s28 = smov 0  }
   0x8   :  { %s1570_s29 = smov 0   ;;  %s1572_s30 = smov 0  }
   0x9   :  { %s1574_s9 = smov 0   ;;  %s1576_s10 = smov 0  }
   0xa   :  { %s1578_s11 = smov 0   ;;  %s1580_s12 = smov 0  }
   0xb   :  { %s1582_s13 = smov 0   ;;  %s1584_s14 = smov 0  }
   0xc LB: > { %2057 = sst [smem:[#allocation9_spill]] %s1502_s11  ;;  %s1228_s15 = sadd.s32 4294967295, %s1514_s14   ;;  %s1514_s14 = sphi %s1584_s14, %s21_s14   ;;  %s1510_s13 = sphi %s1582_s13, %s2076_s13   ;;  %s1506_s12 = sphi %s1580_s12, %s2075_s12   ;;  %s1502_s11 = sphi %s1578_s11, %s2074_s11   ;;  %s1498_s10 = sphi %s1576_s10, %s2068_s10   ;;  %s1494_s9 = sphi %s1574_s9, %s2073_s9   ;;  %s1490_s30 = sphi %s1572_s30, %s2072_s30   ;;  %s1486_s29 = sphi %s1570_s29, %s2071_s29   ;;  %s1482_s28 = sphi %s1568_s28, %s2070_s28   ;;  %s1478_s27 = sphi %s1566_s27, %s2069_s27  }
   0xd   : > { %2058 = sst [smem:[#allocation10_spill]] %s1506_s12  ;;  %s1229_s16 = sadd.s32 4294967294, %s1514_s14  }
   0xe   : > { %s30_s17 = sadd.s32 1, %s1506_s12  ;;  %s33_s18 = sadd.s32 1, %s1510_s13 }
   0xf   : > { %p31_p0 = scmp.ge.s32.totalorder %s30_s17, 2  ;;  %s1230_s19 = sshll.u32 %s1510_s13, 1 }
  0x10   : > { %s1622_s20 = sadd.s32 %s1506_s12, %s1230_s19  ;;  %s44_s21 = sadd.s32 1, %s1494_s9 }
  0x11   : > { %s2078_s17 = smov (%p31_p0, %s30_s17), 0  ;;  %s2080_s18 = smov (!%p31_p0, %s33_s18), %s1510_s13 }
  0x12   : > { %p51_p1 = scmp.ne.s32.totalorder %s1494_s9, %s1490_s30  ;;  %p52_p2 = scmp.eq.s32.totalorder %s1514_s14, 0 }
  0x13   : > { %p35_p3 = scmp.ge.s32.totalorder %s2080_s18, 2  ;;  %s235_s22 = sadd.s32 1, %s1486_s29 }
  0x14   : > { %p1632_p4 = por %p52_p2, %p51_p1  ;;  %p245_p5 = scmp.ne.s32.totalorder %s1486_s29, %s1482_s28 }
  0x15   : > { %s2082_s18 = smov (%p35_p3, %s2080_s18), 0  ;;  %p246_p6 = scmp.eq.s32.totalorder %s1228_s15, 3 }
  0x16   : > { %p251_p7 = scmp.ne.s32.totalorder %s1482_s28, %s1478_s27  ;;  %s1231_s24 = sshll.u32 %s2082_s18, 1 }
  0x17   : > { %s232_s25 = ssub.s32 %s1510_s13, %s2082_s18  ;;  %s40_s26 = sadd.s32 %s1231_s24, %s2078_s17 }
  0x18   : > { %p233_p8 = scmp.eq.s32.totalorder %s232_s25, 0  ;;  %s41_s19 = ssub.s32 %s1622_s20, %s40_s26 }
  0x19   : > { %p1647_p9 = por %p246_p6, %p245_p5  ;;  %p42_p10 = scmp.eq.s32.totalorder %s41_s19, 0 }
  0x1a   : > { %p252_p11 = scmp.eq.s32.totalorder %s1229_s16, 3  ;;  %p1237_p13 = scmp.ge.s32.totalorder %s1514_s14, 4 }
  0x1b   : > { %s1652_s8 = scalar_select %p233_p8, %s1486_s29, %s235_s22  }
  0x1c   : > { %s1655_s11 = scalar_select %p42_p10, %s1494_s9, %s44_s21  }
  0x1d   : > { %p1657_p12 = por %p252_p11, %p251_p7  ;;  %283 = sbr.rel (%p1237_p13) target bundleno = 90 (0x5a), region = 36 }
  0x24   : > { %286 = sbr.rel (!%p1632_p4) target bundleno = 54 (0x36), region = 40  ;;  %s288_s15 = sand.u32 (%p1632_p4), 1, %s1494_s9  }
  0x25   : > { %s1267_s24 = sshll.u32 (%p1632_p4), %s1622_s20, 6  ;;  %s1238_s25 = sshll.u32 (%p1632_p4), %s288_s15, 7 }
  0x26   : > { %s2062_s0 = sld [smem:[#allocation11_spill]] (%p1632_p4)  ;;  %s290_s26 = scalar_lea.vmem (%p1632_p4), [#allocation3], %s1238_s25 }
  0x2c   : > { %s1669_s21 = scalar_lea.vmem %s2062_s0, %s1267_s24 }
  0x2d   : > { %v353_v0 = vld [vmem:[%s1669_s21] sm:$0xff]  ;;  %v355_v1 = vld [vmem:[%s1669_s21 + $0x8] sm:$0xff]  ;;  %v357_v2 = vld [vmem:[%s1669_s21 + $0x10] sm:$0xff] }
  0x2e   : > { %354 = vst [vmem:[%s290_s26] sm:$0xff] %v353_v0  ;;  %356 = vst [vmem:[%s290_s26 + $0x8] sm:$0xff] %v355_v1  ;;  %v359_v3 = vld [vmem:[%s1669_s21 + $0x18] sm:$0xff]  ;;  %v361_v4 = vld [vmem:[%s1669_s21 + $0x20] sm:$0xff] }
  0x2f   : > { %358 = vst [vmem:[%s290_s26 + $0x10] sm:$0xff] %v357_v2  ;;  %v363_v5 = vld [vmem:[%s1669_s21 + $0x28] sm:$0xff]  ;;  %360 = vst [vmem:[%s290_s26 + $0x18] sm:$0xff] %v359_v3  ;;  %v365_v6 = vld [vmem:[%s1669_s21 + $0x30] sm:$0xff] }
  0x30   : > { %362 = vst [vmem:[%s290_s26 + $0x20] sm:$0xff] %v361_v4  ;;  %364 = vst [vmem:[%s290_s26 + $0x28] sm:$0xff] %v363_v5  ;;  %v367_v7 = vld [vmem:[%s1669_s21 + $0x38] sm:$0xff]  ;;  %v369_v8 = vld [vmem:[%s1669_s21 + $0x100] sm:$0xff] }
  0x31   : > { %366 = vst [vmem:[%s290_s26 + $0x30] sm:$0xff] %v365_v6  ;;  %368 = vst [vmem:[%s290_s26 + $0x38] sm:$0xff] %v367_v7  ;;  %v371_v9 = vld [vmem:[%s1669_s21 + $0x108] sm:$0xff]  ;;  %v373_v10 = vld [vmem:[%s1669_s21 + $0x110] sm:$0xff] }
  0x32   : > { %370 = vst [vmem:[%s290_s26 + $0x40] sm:$0xff] %v369_v8  ;;  %v375_v11 = vld [vmem:[%s1669_s21 + $0x118] sm:$0xff]  ;;  %372 = vst [vmem:[%s290_s26 + $0x48] sm:$0xff] %v371_v9  ;;  %v377_v12 = vld [vmem:[%s1669_s21 + $0x120] sm:$0xff] }
  0x33   : > { %374 = vst [vmem:[%s290_s26 + $0x50] sm:$0xff] %v373_v10  ;;  %376 = vst [vmem:[%s290_s26 + $0x58] sm:$0xff] %v375_v11  ;;  %v379_v13 = vld [vmem:[%s1669_s21 + $0x128] sm:$0xff]  ;;  %v381_v14 = vld [vmem:[%s1669_s21 + $0x130] sm:$0xff] }
  0x34   : > { %378 = vst [vmem:[%s290_s26 + $0x60] sm:$0xff] %v377_v12  ;;  %380 = vst [vmem:[%s290_s26 + $0x68] sm:$0xff] %v379_v13  ;;  %v383_v15 = vld [vmem:[%s1669_s21 + $0x138] sm:$0xff] }
  0x35   : > { %382 = vst [vmem:[%s290_s26 + $0x70] sm:$0xff] %v381_v14  ;;  %384 = vst [vmem:[%s290_s26 + $0x78] sm:$0xff] %v383_v15 }
  0x36 PF: > { %390 = sbr.rel (!%p1632_p4) target bundleno = 72 (0x48), region = 78  ;;  %s392_s19 = sand.u32 (%p1632_p4), 1, %s1494_s9  }
  0x37   : > { %s1268_s15 = sshll.u32 (%p1632_p4), %s1622_s20, 6  ;;  %s1242_s24 = sshll.u32 (%p1632_p4), %s392_s19, 7 }
  0x38   : > { %s2063_s1 = sld [smem:[#allocation12_spill]] (%p1632_p4)  ;;  %s394_s21 = scalar_lea.vmem (%p1632_p4), [#allocation4], %s1242_s24 }
  0x3e   : > { %s1694_s22 = scalar_lea.vmem %s2063_s1, %s1268_s15 }
  0x3f   : > { %v457_v16 = vld [vmem:[%s1694_s22] sm:$0xff]  ;;  %v459_v17 = vld [vmem:[%s1694_s22 + $0x8] sm:$0xff]  ;;  %v461_v18 = vld [vmem:[%s1694_s22 + $0x10] sm:$0xff] }
  0x40   : > { %458 = vst [vmem:[%s394_s21] sm:$0xff] %v457_v16  ;;  %460 = vst [vmem:[%s394_s21 + $0x8] sm:$0xff] %v459_v17  ;;  %v463_v19 = vld [vmem:[%s1694_s22 + $0x18] sm:$0xff]  ;;  %v465_v20 = vld [vmem:[%s1694_s22 + $0x20] sm:$0xff] }
  0x41   : > { %462 = vst [vmem:[%s394_s21 + $0x10] sm:$0xff] %v461_v18  ;;  %v467_v21 = vld [vmem:[%s1694_s22 + $0x28] sm:$0xff]  ;;  %464 = vst [vmem:[%s394_s21 + $0x18] sm:$0xff] %v463_v19  ;;  %v469_v22 = vld [vmem:[%s1694_s22 + $0x30] sm:$0xff] }
  0x42   : > { %466 = vst [vmem:[%s394_s21 + $0x20] sm:$0xff] %v465_v20  ;;  %468 = vst [vmem:[%s394_s21 + $0x28] sm:$0xff] %v467_v21  ;;  %v471_v23 = vld [vmem:[%s1694_s22 + $0x38] sm:$0xff]  ;;  %v473_v24 = vld [vmem:[%s1694_s22 + $0x100] sm:$0xff] }
  0x43   : > { %470 = vst [vmem:[%s394_s21 + $0x30] sm:$0xff] %v469_v22  ;;  %472 = vst [vmem:[%s394_s21 + $0x38] sm:$0xff] %v471_v23  ;;  %v475_v25 = vld [vmem:[%s1694_s22 + $0x108] sm:$0xff]  ;;  %v477_v26 = vld [vmem:[%s1694_s22 + $0x110] sm:$0xff] }
  0x44   : > { %474 = vst [vmem:[%s394_s21 + $0x40] sm:$0xff] %v473_v24  ;;  %v479_v27 = vld [vmem:[%s1694_s22 + $0x118] sm:$0xff]  ;;  %476 = vst [vmem:[%s394_s21 + $0x48] sm:$0xff] %v475_v25  ;;  %v481_v28 = vld [vmem:[%s1694_s22 + $0x120] sm:$0xff] }
  0x45   : > { %478 = vst [vmem:[%s394_s21 + $0x50] sm:$0xff] %v477_v26  ;;  %480 = vst [vmem:[%s394_s21 + $0x58] sm:$0xff] %v479_v27  ;;  %v483_v29 = vld [vmem:[%s1694_s22 + $0x128] sm:$0xff]  ;;  %v485_v30 = vld [vmem:[%s1694_s22 + $0x130] sm:$0xff] }
  0x46   : > { %482 = vst [vmem:[%s394_s21 + $0x60] sm:$0xff] %v481_v28  ;;  %484 = vst [vmem:[%s394_s21 + $0x68] sm:$0xff] %v483_v29  ;;  %v487_v31 = vld [vmem:[%s1694_s22 + $0x138] sm:$0xff] }
  0x47   : > { %486 = vst [vmem:[%s394_s21 + $0x70] sm:$0xff] %v485_v30  ;;  %488 = vst [vmem:[%s394_s21 + $0x78] sm:$0xff] %v487_v31 }
  0x48 PF: > { %494 = sbr.rel (!%p1632_p4) target bundleno = 90 (0x5a), region = 116  ;;  %s496_s26 = sand.u32 (%p1632_p4), 1, %s1494_s9  }
  0x49   : > { %s1269_s19 = sshll.u32 (%p1632_p4), %s1622_s20, 6  ;;  %s1246_s15 = sshll.u32 (%p1632_p4), %s496_s26, 7 }
  0x4a   : > { %s2064_s2 = sld [smem:[#allocation13_spill]] (%p1632_p4)  ;;  %s498_s23 = scalar_lea.vmem (%p1632_p4), [#allocation5], %s1246_s15 }
  0x50   : > { %s1719_s16 = scalar_lea.vmem %s2064_s2, %s1269_s19 }
  0x51   : > { %v561_v32 = vld [vmem:[%s1719_s16] sm:$0xff]  ;;  %v563_v33 = vld [vmem:[%s1719_s16 + $0x8] sm:$0xff]  ;;  %v565_v34 = vld [vmem:[%s1719_s16 + $0x10] sm:$0xff] }
  0x52   : > { %562 = vst [vmem:[%s498_s23] sm:$0xff] %v561_v32  ;;  %564 = vst [vmem:[%s498_s23 + $0x8] sm:$0xff] %v563_v33  ;;  %v567_v35 = vld [vmem:[%s1719_s16 + $0x18] sm:$0xff]  ;;  %v569_v36 = vld [vmem:[%s1719_s16 + $0x20] sm:$0xff] }
  0x53   : > { %566 = vst [vmem:[%s498_s23 + $0x10] sm:$0xff] %v565_v34  ;;  %v571_v37 = vld [vmem:[%s1719_s16 + $0x28] sm:$0xff]  ;;  %568 = vst [vmem:[%s498_s23 + $0x18] sm:$0xff] %v567_v35  ;;  %v573_v38 = vld [vmem:[%s1719_s16 + $0x30] sm:$0xff] }
  0x54   : > { %570 = vst [vmem:[%s498_s23 + $0x20] sm:$0xff] %v569_v36  ;;  %572 = vst [vmem:[%s498_s23 + $0x28] sm:$0xff] %v571_v37  ;;  %v575_v39 = vld [vmem:[%s1719_s16 + $0x38] sm:$0xff]  ;;  %v577_v40 = vld [vmem:[%s1719_s16 + $0x100] sm:$0xff] }
  0x55   : > { %574 = vst [vmem:[%s498_s23 + $0x30] sm:$0xff] %v573_v38  ;;  %576 = vst [vmem:[%s498_s23 + $0x38] sm:$0xff] %v575_v39  ;;  %v579_v41 = vld [vmem:[%s1719_s16 + $0x108] sm:$0xff]  ;;  %v581_v42 = vld [vmem:[%s1719_s16 + $0x110] sm:$0xff] }
  0x56   : > { %578 = vst [vmem:[%s498_s23 + $0x40] sm:$0xff] %v577_v40  ;;  %v583_v43 = vld [vmem:[%s1719_s16 + $0x118] sm:$0xff]  ;;  %580 = vst [vmem:[%s498_s23 + $0x48] sm:$0xff] %v579_v41  ;;  %v585_v44 = vld [vmem:[%s1719_s16 + $0x120] sm:$0xff] }
  0x57   : > { %582 = vst [vmem:[%s498_s23 + $0x50] sm:$0xff] %v581_v42  ;;  %584 = vst [vmem:[%s498_s23 + $0x58] sm:$0xff] %v583_v43  ;;  %v587_v45 = vld [vmem:[%s1719_s16 + $0x128] sm:$0xff]  ;;  %v589_v46 = vld [vmem:[%s1719_s16 + $0x130] sm:$0xff] }
  0x58   : > { %586 = vst [vmem:[%s498_s23 + $0x60] sm:$0xff] %v585_v44  ;;  %588 = vst [vmem:[%s498_s23 + $0x68] sm:$0xff] %v587_v45  ;;  %v591_v47 = vld [vmem:[%s1719_s16 + $0x138] sm:$0xff] }
  0x59   : > { %590 = vst [vmem:[%s498_s23 + $0x70] sm:$0xff] %v589_v46  ;;  %592 = vst [vmem:[%s498_s23 + $0x78] sm:$0xff] %v591_v47 }
  0x5a PF: > { %p1250_p0 = scmp.ge.s32.totalorder %s1514_s14, 1  ;;  %p597_p1 = scmp.lt.s32.totalorder %s1514_s14, 5 }
  0x5c   : > { %p598_p2 = pnand %p1250_p0, %p597_p1 }
  0x5d   : > { %s604_s20 = sand.u32 (!%p598_p2), 1, %s1490_s30   ;;  %s656_s22 = sand.u32 (!%p598_p2), 1, %s1482_s28  }
  0x5e   : > { %601 = sbr.rel (%p598_p2) target bundleno = 540 (0x21c), region = 154  ;;  %s1251_s21 = sshll.u32 (!%p598_p2), %s604_s20, 7 }
  0x5f   : > { %s1743_s26 = sshll.u32 (!%p598_p2), %s656_s22, 3  ;;  %s1745_s19 = scalar_lea.vmem (!%p598_p2), [#allocation3], %s1251_s21 }
  0x60   : > { %s1747_s15 = scalar_lea.vmem (!%p598_p2), [#allocation4], %s1251_s21  ;;  %s1749_s24 = scalar_lea.vmem (!%p598_p2), [#allocation5], %s1251_s21 }
  0x61   : > { %s658_s25 = scalar_lea.vmem (!%p598_p2), [#allocation6], %s1743_s26  ;;  %p1255_p3 = scmp.ne.s32.totalorder (!%p598_p2), %s1498_s10, 0 }
  0x65   : > { %671 = sbr.rel (%p1255_p3) target bundleno = 110 (0x6e), region = 170  ;;  %vm672_vm0 = vcmask (!%p1255_p3), 523264   ;;  %v1516_v48 = vmov (!%p1255_p3), 0.0  }
  0x66   : > { %673 = vst.msk [vmem:[#allocation2] sm:$0xff] (!%p1255_p3), %vm672_vm0, %v1516_v48  ;;  %674 = vst.msk [vmem:[#allocation2 + $0x8] sm:$0xff] (!%p1255_p3), %vm672_vm0, %v1516_v48 }
  0x67   : > { %675 = vst.msk [vmem:[#allocation2 + $0x10] sm:$0xff] (!%p1255_p3), %vm672_vm0, %v1516_v48  ;;  %676 = vst.msk [vmem:[#allocation2 + $0x18] sm:$0xff] (!%p1255_p3), %vm672_vm0, %v1516_v48 }
  0x68   : > { %677 = vst.msk [vmem:[#allocation2 + $0x20] sm:$0xff] (!%p1255_p3), %vm672_vm0, %v1516_v48  ;;  %678 = vst.msk [vmem:[#allocation2 + $0x28] sm:$0xff] (!%p1255_p3), %vm672_vm0, %v1516_v48 }
  0x69   : > { %679 = vst.msk [vmem:[#allocation2 + $0x30] sm:$0xff] (!%p1255_p3), %vm672_vm0, %v1516_v48  ;;  %680 = vst.msk [vmem:[#allocation2 + $0x38] sm:$0xff] (!%p1255_p3), %vm672_vm0, %v1516_v48 }
  0x6a   : > { %681 = vst.msk [vmem:[#allocation2 + $0x40] sm:$0xff] (!%p1255_p3), %vm672_vm0, %v1516_v48  ;;  %682 = vst.msk [vmem:[#allocation2 + $0x48] sm:$0xff] (!%p1255_p3), %vm672_vm0, %v1516_v48 }
  0x6b   : > { %683 = vst.msk [vmem:[#allocation2 + $0x50] sm:$0xff] (!%p1255_p3), %vm672_vm0, %v1516_v48  ;;  %684 = vst.msk [vmem:[#allocation2 + $0x58] sm:$0xff] (!%p1255_p3), %vm672_vm0, %v1516_v48 }
  0x6c   : > { %685 = vst.msk [vmem:[#allocation2 + $0x60] sm:$0xff] %vm672_vm0, %v1516_v48  ;;  %686 = vst.msk [vmem:[#allocation2 + $0x68] sm:$0xff] %vm672_vm0, %v1516_v48 }
  0x6d   : > { %687 = vst.msk [vmem:[#allocation2 + $0x70] sm:$0xff] %vm672_vm0, %v1516_v48  ;;  %688 = vst.msk [vmem:[#allocation2 + $0x78] sm:$0xff] %vm672_vm0, %v1516_v48 }
  0x6e PF: > { %v1770_v49 = vld [vmem:[%s1749_s24] sm:$0xff]  ;;  %v690_v53 = vld [vmem:[%s1745_s19 + $0x8] sm:$0xff]  ;;  %v691_v58 = vld [vmem:[%s1745_s19 + $0x10] sm:$0xff]  ;;  %vm897_vm1 = vcmask 523264   ;;  %p1256_p4 = scmp.ne.s32.totalorder %s1498_s10, 1 }
  0x6f   : > { %v689_v50 = vld [vmem:[%s1745_s19] sm:$0xff]  ;;  %v769_v52 = vmul.f32 -2.0, %v1770_v49  ;;  %v706_v54 = vld [vmem:[%s1747_s15 + $0x8] sm:$0xff]  ;;  %v707_v59 = vld [vmem:[%s1747_s15 + $0x10] sm:$0xff]  ;;  %vm1040_vm6 = vcmask (!%p1256_p4), 1041408   ;;  %vm994_vm7 = vcmask (!%p1256_p4), 254976  }
  0x70   : > { %v705_v51 = vld [vmem:[%s1747_s15] sm:$0xff]  ;;  %v1778_v55 = vld [vmem:[%s1749_s24 + $0x8] sm:$0xff]  ;;  %v1784_v60 = vld [vmem:[%s1749_s24 + $0x10] sm:$0xff]  ;;  %v738_v2 = vsub.f32 %v690_v53, %v706_v54  ;;  %v739_v5 = vsub.f32 %v691_v58, %v707_v59 }
  0x71   : > { %v785_v56 = vmul.f32 1.442695, %v769_v52  ;;  %v770_v57 = vmul.f32 -2.0, %v1778_v55  ;;  %v737_v61 = vsub.f32 %v689_v50, %v705_v51  ;;  %v771_v62 = vmul.f32 -2.0, %v1784_v60  ;;  %v692_v63 = vld [vmem:[%s1745_s19 + $0x18] sm:$0xff]  ;;  %v693_v7 = vld [vmem:[%s1745_s19 + $0x20] sm:$0xff] }
  0x72   : > { %v708_v0 = vld [vmem:[%s1747_s15 + $0x18] sm:$0xff]  ;;  %v709_v8 = vld [vmem:[%s1747_s15 + $0x20] sm:$0xff]  ;;  %v694_v13 = vld [vmem:[%s1745_s19 + $0x28] sm:$0xff]  ;;  %v1809_v20 = vmul.f32 %v738_v2, %v738_v2  ;;  %v1815_v26 = vmul.f32 %v739_v5, %v739_v5 }
  0x73   : > { %v1790_v1 = vld [vmem:[%s1749_s24 + $0x18] sm:$0xff]  ;;  %1369 = vpow2.f32 %v785_v56  ;;  %v787_v3 = vmul.f32 1.442695, %v770_v57  ;;  %v789_v6 = vmul.f32 1.442695, %v771_v62  ;;  %v1796_v9 = vld [vmem:[%s1749_s24 + $0x20] sm:$0xff]  ;;  %v740_v10 = vsub.f32 %v692_v63, %v708_v0 }
  0x74   : > { %v772_v4 = vmul.f32 -2.0, %v1790_v1  ;;  %v773_v12 = vmul.f32 -2.0, %v1796_v9  ;;  %v710_v14 = vld [vmem:[%s1747_s15 + $0x28] sm:$0xff]  ;;  %v833_v16 = vmul.f32 %v737_v61, %v737_v61  ;;  %v695_v18 = vld [vmem:[%s1745_s19 + $0x30] sm:$0xff]  ;;  %v696_v24 = vld [vmem:[%s1745_s19 + $0x38] sm:$0xff]  ;;  %v741_v27 = vsub.f32 %v693_v7, %v709_v8 }
  0x75   : > { %1371 = vpow2.f32 %v787_v3  ;;  %v1802_v15 = vld [vmem:[%s1749_s24 + $0x28] sm:$0xff]  ;;  %v1807_v19 = vld [vmem:[%s1749_s24 + $0x30] sm:$0xff]  ;;  %v712_v25 = vld [vmem:[%s1747_s15 + $0x38] sm:$0xff]  ;;  %v742_v28 = vsub.f32 %v694_v13, %v710_v14  ;;  %v1821_v32 = vmul.f32 %v740_v10, %v740_v10 }
  0x76   : > { %v791_v11 = vmul.f32 1.442695, %v772_v4  ;;  %1373 = vpow2.f32 %v789_v6  ;;  %v774_v17 = vmul.f32 -2.0, %v1802_v15  ;;  %v793_v21 = vmul.f32 1.442695, %v773_v12  ;;  %v711_v22 = vld [vmem:[%s1747_s15 + $0x30] sm:$0xff] }
  0x77   : > { %v775_v23 = vmul.f32 -2.0, %v1807_v19  ;;  %v1818_v30 = vld [vmem:[%s1749_s24 + $0x38] sm:$0xff]  ;;  %v697_v31 = vld [vmem:[%s1745_s19 + $0x40] sm:$0xff]  ;;  %v743_v37 = vsub.f32 %v695_v18, %v711_v22  ;;  %v744_v38 = vsub.f32 %v696_v24, %v712_v25  ;;  %v698_v40 = vld [vmem:[%s1745_s19 + $0x48] sm:$0xff]  ;;  %v837_v48 = vmul.f32 %v741_v27, %v741_v27 }
  0x78   : > { %1375 = vpow2.f32 %v791_v11  ;;  %v795_v29 = vmul.f32 1.442695, %v774_v17  ;;  %v776_v34 = vmul.f32 -2.0, %v1818_v30  ;;  %v713_v35 = vld [vmem:[%s1747_s15 + $0x40] sm:$0xff]  ;;  %v714_v41 = vld [vmem:[%s1747_s15 + $0x48] sm:$0xff]  ;;  %v699_v46 = vld [vmem:[%s1745_s19 + $0x50] sm:$0xff]  ;;  %v1837_v50 = vmul.f32 %v742_v28, %v742_v28 }
  0x79   : > { %1377 = vpow2.f32 %v793_v21  ;;  %v797_v33 = vmul.f32 1.442695, %v775_v23  ;;  %v1826_v36 = vld [vmem:[%s1749_s24 + $0x40] sm:$0xff]  ;;  %v1832_v42 = vld [vmem:[%s1749_s24 + $0x48] sm:$0xff]  ;;  %v745_v44 = vsub.f32 %v697_v31, %v713_v35  ;;  %v715_v47 = vld [vmem:[%s1747_s15 + $0x50] sm:$0xff]  ;;  %v746_v52 = vsub.f32 %v698_v40, %v714_v41 }
  0x7a   : > { %1379 = vpow2.f32 %v795_v29  ;;  %v777_v39 = vmul.f32 -2.0, %v1826_v36  ;;  %v799_v43 = vmul.f32 1.442695, %v776_v34  ;;  %v778_v45 = vmul.f32 -2.0, %v1832_v42  ;;  %v1840_v53 = vld [vmem:[%s1749_s24 + $0x50] sm:$0xff]  ;;  %v1844_v59 = vld [vmem:[%s1749_s24 + $0x58] sm:$0xff] }
  0x7b   : > { %1381 = vpow2.f32 %v797_v33  ;;  %v747_v57 = vsub.f32 %v699_v46, %v715_v47  ;;  %v779_v58 = vmul.f32 -2.0, %v1840_v53  ;;  %v1846_v62 = vmul.f32 %v743_v37, %v743_v37  ;;  %v1851_v0 = vld [vmem:[%s1749_s24 + $0x60] sm:$0xff]  ;;  %v700_v11 = vld [vmem:[%s1745_s19 + $0x58] sm:$0xff]  ;;  %v1862_v14 = vld [vmem:[%s1749_s24 + $0x68] sm:$0xff] }
  0x7c   : > { %v801_v51 = vmul.f32 1.442695, %v777_v39  ;;  %1383 = vpow2.f32 %v799_v43  ;;  %v803_v56 = vmul.f32 1.442695, %v778_v45  ;;  %v1848_v63 = vmul.f32 %v744_v38, %v744_v38  ;;  %v716_v12 = vld [vmem:[%s1747_s15 + $0x58] sm:$0xff]  ;;  %v753_v18 = vld [vmem:[#allocation2] sm:$0xff] }
  0x7d   : > { %v1370_v54 = vpop.eup %1369  ;;  %v1853_v3 = vmul.f32 %v745_v44, %v745_v44  ;;  %v805_v4 = vmul.f32 1.442695, %v779_v58  ;;  %v780_v5 = vmul.f32 -2.0, %v1844_v59  ;;  %v1856_v10 = vmul.f32 %v746_v52, %v746_v52  ;;  %v754_v29 = vld [vmem:[#allocation2 + $0x8] sm:$0xff]  ;;  %v755_v39 = vld [vmem:[#allocation2 + $0x10] sm:$0xff]  ;;  %v701_v40 = vld [vmem:[%s1745_s19 + $0x60] sm:$0xff] }
  0x7e   : > { %v817_v61 = vmul.f32 0.5, %v1370_v54  ;;  %1385 = vpow2.f32 %v801_v51  ;;  %v781_v13 = vmul.f32 -2.0, %v1851_v0  ;;  %v1864_v22 = vmul.f32 %v747_v57, %v747_v57  ;;  %v717_v41 = vld [vmem:[%s1747_s15 + $0x60] sm:$0xff]  ;;  %v756_v45 = vld [vmem:[#allocation2 + $0x18] sm:$0xff] }
  0x7f   : > { %v1372_v2 = vpop.eup %1371  ;;  %1387 = vpow2.f32 %v803_v56  ;;  %v807_v23 = vmul.f32 1.442695, %v780_v5  ;;  %v748_v33 = vsub.f32 %v700_v11, %v716_v12  ;;  %v782_v34 = vmul.f32 -2.0, %v1862_v14  ;;  %v757_v57 = vld [vmem:[#allocation2 + $0x20] sm:$0xff]  ;;  %v759_v11 = vld [vmem:[#allocation2 + $0x30] sm:$0xff] }
  0x80   : > { %v1374_v6 = vpop.eup %1373  ;;  %v849_v7 = vmul.f32 %v833_v16, %v817_v61  ;;  %v818_v8 = vmul.f32 0.5, %v1372_v2  ;;  %1389 = vpow2.f32 %v805_v4  ;;  %v809_v27 = vmul.f32 1.442695, %v781_v13 }
  0x81   : > { %v819_v21 = vmul.f32 0.5, %v1374_v6  ;;  %1391 = vpow2.f32 %v807_v23  ;;  %v811_v46 = vmul.f32 1.442695, %v782_v34  ;;  %v749_v58 = vsub.f32 %v701_v40, %v717_v41  ;;  %v702_v6 = vld [vmem:[%s1745_s19 + $0x68] sm:$0xff]  ;;  %v1893_v23 = vld [vmem:[%s1749_s24 + $0x78] sm:$0xff]  ;;  %v719_v40 = vld [vmem:[%s1747_s15 + $0x70] sm:$0xff] }
  0x82   : > { %v1376_v17 = vpop.eup %1375  ;;  %v865_v24 = vadd.f32 %v849_v7, %v1770_v49  ;;  %v850_v16 = vmul.f32 %v1809_v20, %v818_v8  ;;  %1393 = vpow2.f32 %v809_v27  ;;  %v718_v7 = vld [vmem:[%s1747_s15 + $0x68] sm:$0xff]  ;;  %v844_v13 = vmul.f32 %v748_v33, %v748_v33  ;;  %v761_v33 = vld [vmem:[#allocation2 + $0x40] sm:$0xff] }
  0x83   : > { %v820_v25 = vmul.f32 0.5, %v1376_v17  ;;  %v1378_v28 = vpop.eup %1377  ;;  %v851_v31 = vmul.f32 %v1815_v26, %v819_v21  ;;  %1395 = vpow2.f32 %v811_v46  ;;  %v750_v27 = vsub.f32 %v702_v6, %v718_v7 }
  0x84   : > { %v1380_v35 = vpop.eup %1379  ;;  %v881_v37 = vadd.f32 %v865_v24, %v753_v18  ;;  %v866_v38 = vadd.f32 %v850_v16, %v1778_v55  ;;  %v821_v20 = vmul.f32 0.5, %v1378_v28 }
  0x85   : > { %v852_v49 = vmul.f32 %v1821_v32, %v820_v25  ;;  %v1382_v43 = vpop.eup %1381  ;;  %v867_v44 = vadd.f32 %v851_v31, %v1784_v60  ;;  %v822_v26 = vmul.f32 0.5, %v1380_v35  ;;  %v1878_v32 = vld [vmem:[%s1749_s24 + $0x70] sm:$0xff]  ;;  %v760_v25 = vld [vmem:[#allocation2 + $0x38] sm:$0xff] }
  0x86   : > { %898 = vst.msk [vmem:[#allocation2] sm:$0xff] %vm897_vm1, %v881_v37  ;;  %v882_v47 = vadd.f32 %v866_v38, %v754_v29  ;;  %v853_v55 = vmul.f32 %v837_v48, %v821_v20  ;;  %v823_v52 = vmul.f32 0.5, %v1382_v43  ;;  %v1384_v54 = vpop.eup %1383  ;;  %v783_v17 = vmul.f32 -2.0, %v1878_v32  ;;  %v762_v37 = vld [vmem:[#allocation2 + $0x48] sm:$0xff] }
  0x87   : > { %v868_v51 = vadd.f32 %v852_v49, %v1790_v1  ;;  %v883_v56 = vadd.f32 %v867_v44, %v755_v39  ;;  %v854_v60 = vmul.f32 %v1837_v50, %v822_v26  ;;  %v758_v1 = vld [vmem:[#allocation2 + $0x28] sm:$0xff]  ;;  %v824_v5 = vmul.f32 0.5, %v1384_v54  ;;  %v763_v44 = vld [vmem:[#allocation2 + $0x50] sm:$0xff] }
  0x88   : > { %v1386_v61 = vpop.eup %1385  ;;  %899 = vst.msk [vmem:[#allocation2 + $0x8] sm:$0xff] %vm897_vm1, %v882_v47  ;;  %v869_v4 = vadd.f32 %v853_v55, %v1796_v9  ;;  %v855_v48 = vmul.f32 %v1846_v62, %v823_v52  ;;  %v813_v28 = vmul.f32 1.442695, %v783_v17  ;;  %v784_v38 = vmul.f32 -2.0, %v1893_v23 }
  0x89   : > { %v884_v2 = vadd.f32 %v868_v51, %v756_v45  ;;  %v1388_v8 = vpop.eup %1387  ;;  %900 = vst.msk [vmem:[#allocation2 + $0x10] sm:$0xff] %vm897_vm1, %v883_v56  ;;  %v870_v50 = vadd.f32 %v854_v60, %v1802_v15  ;;  %v825_v12 = vmul.f32 0.5, %v1386_v61  ;;  %v856_v62 = vmul.f32 %v1848_v63, %v824_v5  ;;  %v765_v60 = vld [vmem:[#allocation2 + $0x60] sm:$0xff]  ;;  %v720_v61 = vld [vmem:[%s1747_s15 + $0x78] sm:$0xff]  ;;  %s2065_s15 = sld [smem:[#allocation14_spill]] (!%p1256_p4) }
  0x8a   : > { %v885_v9 = vadd.f32 %v869_v4, %v757_v57  ;;  %v871_v18 = vadd.f32 %v855_v48, %v1807_v19  ;;  %v826_v21 = vmul.f32 0.5, %v1388_v8  ;;  %v1390_v24 = vpop.eup %1389  ;;  %1397 = vpow2.f32 %v813_v28 }
  0x8b   : > { %901 = vst.msk [vmem:[#allocation2 + $0x18] sm:$0xff] %vm897_vm1, %v884_v2  ;;  %v886_v16 = vadd.f32 %v870_v50, %v758_v1  ;;  %v857_v15 = vmul.f32 %v1853_v3, %v825_v12  ;;  %v872_v31 = vadd.f32 %v856_v62, %v1818_v30  ;;  %v827_v63 = vmul.f32 0.5, %v1390_v24  ;;  %v1392_v34 = vpop.eup %1391  ;;  %v766_v1 = vld [vmem:[#allocation2 + $0x68] sm:$0xff] }
  0x8c   : > { %902 = vst.msk [vmem:[#allocation2 + $0x20] sm:$0xff] %vm897_vm1, %v885_v9  ;;  %v887_v29 = vadd.f32 %v871_v18, %v759_v11  ;;  %v858_v19 = vmul.f32 %v1856_v10, %v826_v21  ;;  %v845_v3 = vmul.f32 %v749_v58, %v749_v58  ;;  %v828_v20 = vmul.f32 0.5, %v1392_v34  ;;  %v703_v10 = vld [vmem:[%s1745_s19 + $0x70] sm:$0xff]  ;;  %v1394_v41 = vpop.eup %1393  ;;  %v704_v58 = vld [vmem:[%s1745_s19 + $0x78] sm:$0xff] }
  0x8d   : > { %903 = vst.msk [vmem:[#allocation2 + $0x28] sm:$0xff] %vm897_vm1, %v886_v16  ;;  %v873_v35 = vadd.f32 %v857_v15, %v1826_v36  ;;  %v888_v39 = vadd.f32 %v872_v31, %v760_v25  ;;  %v859_v49 = vmul.f32 %v1864_v22, %v827_v63  ;;  %v846_v45 = vmul.f32 %v750_v27, %v750_v27  ;;  %v764_v22 = vld [vmem:[#allocation2 + $0x58] sm:$0xff]  ;;  %v979_v16 = vld [vmem:[%s2047_s6] sm:$0x3] (!%p1256_p4) }
  0x8e   : > { %904 = vst.msk [vmem:[#allocation2 + $0x30] sm:$0xff] %vm897_vm1, %v887_v29  ;;  %v874_v30 = vadd.f32 %v858_v19, %v1832_v42  ;;  %v815_v36 = vmul.f32 1.442695, %v784_v38  ;;  %v860_v47 = vmul.f32 %v844_v13, %v828_v20  ;;  %v829_v51 = vmul.f32 0.5, %v1394_v41  ;;  %v1396_v42 = vpop.eup %1395  ;;  %v768_v21 = vld [vmem:[#allocation2 + $0x78] sm:$0xff]  ;;  %v918_v15 = vld [vmem:[#allocation2] sm:$0xff] (!%p1256_p4) }
  0x8f   : > { %v889_v43 = vadd.f32 %v873_v35, %v761_v33  ;;  %905 = vst.msk [vmem:[#allocation2 + $0x38] sm:$0xff] %vm897_vm1, %v888_v39  ;;  %v875_v46 = vadd.f32 %v859_v49, %v1840_v53  ;;  %v751_v55 = vsub.f32 %v703_v10, %v719_v40  ;;  %v830_v57 = vmul.f32 0.5, %v1396_v42  ;;  %v919_v27 = vld [vmem:[#allocation2 + $0x8] sm:$0xff] (!%p1256_p4) }
  0x90   : > { %v890_v26 = vadd.f32 %v874_v30, %v762_v37  ;;  %1399 = vpow2.f32 %v815_v36  ;;  %v876_v54 = vadd.f32 %v860_v47, %v1844_v59  ;;  %v861_v56 = vmul.f32 %v845_v3, %v829_v51 }
  0x91   : > { %906 = vst.msk [vmem:[#allocation2 + $0x40] sm:$0xff] %vm897_vm1, %v889_v43  ;;  %v891_v52 = vadd.f32 %v875_v46, %v763_v44  ;;  %v862_v4 = vmul.f32 %v846_v45, %v830_v57  ;;  %v847_v6 = vmul.f32 %v751_v55, %v751_v55  ;;  %v752_v7 = vsub.f32 %v704_v58, %v720_v61 }
  0x92   : > { %907 = vst.msk [vmem:[#allocation2 + $0x48] sm:$0xff] %vm897_vm1, %v890_v26  ;;  %v892_v53 = vadd.f32 %v876_v54, %v764_v22  ;;  %v877_v2 = vadd.f32 %v861_v56, %v1851_v0  ;;  %v767_v0 = vld [vmem:[#allocation2 + $0x70] sm:$0xff]  ;;  %v1517_v25 = vmov (!%p1256_p4), 0   ;;  %v921_v28 = vld [vmem:[#allocation2 + $0x18] sm:$0xff] (!%p1256_p4)  ;;  %v934_v29 = vsel (!%p1256_p4), %vm897_vm1, %v918_v15, 0.0 }
  0x93   : > { %908 = vst.msk [vmem:[#allocation2 + $0x50] sm:$0xff] %vm897_vm1, %v891_v52  ;;  %v878_v5 = vadd.f32 %v862_v4, %v1862_v14  ;;  %v848_v12 = vmul.f32 %v752_v7, %v752_v7  ;;  %1401 = vset.pattern.permute.xlu0 (!%p1256_p4), %v1517_v25  ;;  %v935_v31 = vsel (!%p1256_p4), %vm897_vm1, %v919_v27, 0.0  ;;  %v922_v19 = vld [vmem:[#allocation2 + $0x20] sm:$0xff] (!%p1256_p4)  ;;  %v939_v34 = vsel (!%p1256_p4), %vm897_vm1, %v921_v28, 0.0  ;;  %v1261_v15 = vld [vmem:[%s2046_s5 + $0x8] sm:$0xf] (!%p1256_p4) }
  0x94   : > { %909 = vst.msk [vmem:[#allocation2 + $0x58] sm:$0xff] %vm897_vm1, %v892_v53  ;;  %v893_v48 = vadd.f32 %v877_v2, %v765_v60  ;;  %v1398_v59 = vpop.eup %1397  ;;  %981 = vperm.xlu0 (!%p1256_p4), %1401, %v979_v16   ;;  %v936_v63 = vadd.f32 (!%p1256_p4), %v935_v31, %v934_v29  ;;  %v923_v35 = vld [vmem:[#allocation2 + $0x28] sm:$0xff] (!%p1256_p4)  ;;  %v941_v3 = vsel (!%p1256_p4), %vm897_vm1, %v922_v19, 0.0  ;;  %v1519_v25 = vmov (!%p1256_p4), 0.0  }
  0x95   : > { %v894_v8 = vadd.f32 %v878_v5, %v766_v1  ;;  %v831_v50 = vmul.f32 0.5, %v1398_v59  ;;  %v924_v38 = vld [vmem:[#allocation2 + $0x30] sm:$0xff] (!%p1256_p4)  ;;  %v943_v30 = vsel (!%p1256_p4), %vm897_vm1, %v923_v35, 0.0  ;;  %v977_v59 = vlaneseq (!%p1256_p4)  ;;  %v1262_v27 = vld [vmem:[%s2046_s5 + $0xc] sm:$0xf] (!%p1256_p4) }
  0x96   : > { %910 = vst.msk [vmem:[#allocation2 + $0x60] sm:$0xff] %vm897_vm1, %v893_v48  ;;  %v925_v49 = vld [vmem:[#allocation2 + $0x38] sm:$0xff] (!%p1256_p4)  ;;  %v945_v10 = vsel (!%p1256_p4), %vm897_vm1, %v924_v38, 0.0 }
  0x97   : > { %911 = vst.msk [vmem:[#allocation2 + $0x68] sm:$0xff] %vm897_vm1, %v894_v8  ;;  %v863_v11 = vmul.f32 %v847_v6, %v831_v50  ;;  %v947_v43 = vsel (!%p1256_p4), %vm897_vm1, %v925_v49, 0.0  ;;  %v1518_v8 = vmov (!%p1256_p4), 1983009808  }
  0x98   : > { %v926_v40 = vld [vmem:[#allocation2 + $0x40] sm:$0xff] (!%p1256_p4)  ;;  %v1027_v50 = vunpack.c.l.s4 (!%p1256_p4), %v1518_v8 }
  0x99   : > { %v879_v17 = vadd.f32 %v863_v11, %v1878_v32  ;;  %v1006_v32 = vld [vmem:[%s2048_s7] sm:$0x3] (!%p1256_p4)  ;;  %v927_v44 = vld [vmem:[#allocation2 + $0x48] sm:$0xff] (!%p1256_p4)  ;;  %v949_v36 = vsel (!%p1256_p4), %vm897_vm1, %v926_v40, 0.0 }
  0x9a   : > { %v1400_v13 = vpop.eup %1399  ;;  %1008 = vperm.xlu0 (!%p1256_p4), %1401, %v1006_v32   ;;  %v928_v26 = vld [vmem:[#allocation2 + $0x50] sm:$0xff] (!%p1256_p4)  ;;  %v951_v47 = vsel (!%p1256_p4), %vm897_vm1, %v927_v44, 0.0  ;;  %v1028_v11 = vunpack.c.0.s8 (!%p1256_p4), %v1027_v50  ;;  %v974_v40 = vld [vmem:[%s2065_s15] sm:$0x3] (!%p1256_p4) }
  0x9b   : > { %v832_v9 = vmul.f32 0.5, %v1400_v13  ;;  %v895_v18 = vadd.f32 %v879_v17, %v767_v0  ;;  %v929_v51 = vld [vmem:[#allocation2 + $0x58] sm:$0xff] (!%p1256_p4)  ;;  %v953_v22 = vsel (!%p1256_p4), %vm897_vm1, %v928_v26, 0.0  ;;  %v1016_v13 = vld [vmem:[%s2046_s5] sm:$0xf] (!%p1256_p4) }
  0x9c   : > { %v955_v54 = vsel (!%p1256_p4), %vm897_vm1, %v929_v51, 0.0  ;;  %v1260_v0 = vld [vmem:[%s2046_s5 + $0x4] sm:$0xf] (!%p1256_p4) }
  0x9d   : > { %v864_v62 = vmul.f32 %v848_v12, %v832_v9  ;;  %912 = vst.msk [vmem:[#allocation2 + $0x70] sm:$0xff] %vm897_vm1, %v895_v18  ;;  %917 = sbr.rel (%p1256_p4) target bundleno = 515 (0x203), region = 174  ;;  %v930_v55 = vld [vmem:[#allocation2 + $0x60] sm:$0xff] (!%p1256_p4)  ;;  %v1030_v12 = vshrl.u32 (!%p1256_p4), %v977_v59, 7  ;;  %v1019_v17 = vsub.f32 (!%p1256_p4), %v1016_v13, %v1260_v0 }
  0x9e   : > { %v931_v56 = vld [vmem:[#allocation2 + $0x68] sm:$0xff] (!%p1256_p4)  ;;  %v957_v60 = vsel (!%p1256_p4), %vm897_vm1, %v930_v55, 0.0  ;;  %v975_v18 = vld [vmem:[%s2045_s4] sm:$0x3] (!%p1256_p4) }
  0x9f   : > { %v880_v14 = vadd.f32 %v864_v62, %v1893_v23  ;;  %v920_v23 = vld [vmem:[#allocation2 + $0x10] sm:$0xff] (!%p1256_p4)  ;;  %v959_v53 = vsel (!%p1256_p4), %vm897_vm1, %v931_v56, 0.0  ;;  %v1031_v9 = vsub.s32 (!%p1256_p4), %v1028_v11, %v1030_v12  ;;  %v1956_v62 = vand.u32 (!%p1256_p4), 127, %v977_v59 }
  0xa0   : > { %v937_v33 = vsel (!%p1256_p4), %vm897_vm1, %v920_v23, 0.0 }
  0xa1   : > { %v896_v24 = vadd.f32 %v880_v14, %v768_v21  ;;  %v938_v37 = vadd.f32 (!%p1256_p4), %v937_v33, %v936_v63  ;;  %v1032_v21 = vrot.slane (!%p1256_p4), %v1019_v17, %v1031_v9  ;;  %v1005_v16 = vadd.s32 (!%p1256_p4), 128, %v1956_v62 }
  0xa2   : > { %v1024_v33 = vsub.f32 (!%p1256_p4), %v1261_v15, %v1262_v27  ;;  %vm1080_vm8 = vcmp.eq.s32.totalorder (!%p1256_p4), %v1956_v62, 0  ;;  %vm1083_vm9 = vcmp.eq.s32.totalorder (!%p1256_p4), %v1956_v62, 1  ;;  %vm1087_vm10 = vcmp.eq.s32.totalorder (!%p1256_p4), %v1956_v62, 2 }
  0xa3   : > { %913 = vst.msk [vmem:[#allocation2 + $0x78] sm:$0xff] %vm897_vm1, %v896_v24  ;;  %v940_v39 = vadd.f32 (!%p1256_p4), %v939_v34, %v938_v37  ;;  %v976_v24 = vcvt.s32.f32 (!%p1256_p4), %v975_v18  ;;  %v1033_v23 = vcombine.high (!%p1256_p4), %v1032_v21, %v1032_v21  ;;  %vm1091_vm11 = vcmp.eq.s32.totalorder (!%p1256_p4), %v1956_v62, 3 }
  0xa4   : > { %v932_v58 = vld [vmem:[#allocation2 + $0x70] sm:$0xff]  ;;  %v1060_v38 = vrot.slane %v1024_v33, %v1031_v9 }
  0xa5   : > { %v942_v20 = vadd.f32 %v941_v3, %v940_v39  ;;  %v961_v1 = vsel %vm897_vm1, %v932_v58, 0.0 }
  0xa7   : > { %v944_v41 = vadd.f32 %v943_v30, %v942_v20  ;;  %v1061_v20 = vcombine.high %v1060_v38, %v1060_v38 }
  0xa9   : > { %v946_v45 = vadd.f32 %v945_v10, %v944_v41 }
  0xaa   : > { %v933_v2 = vld [vmem:[#allocation2 + $0x78] sm:$0xff] }
  0xab   : > { %v948_v46 = vadd.f32 %v947_v43, %v946_v45  ;;  %v963_v5 = vsel %vm897_vm1, %v933_v2, 0.0 }
  0xad   : > { %v950_v42 = vadd.f32 %v949_v36, %v948_v46 }
  0xaf   : > { %v952_v52 = vadd.f32 %v951_v47, %v950_v42 }
  0xb1   : > { %v954_v57 = vadd.f32 %v953_v22, %v952_v52 }
  0xb3   : > { %v956_v61 = vadd.f32 %v955_v54, %v954_v57 }
  0xb5   : > { %v958_v4 = vadd.f32 %v957_v60, %v956_v61 }
  0xb7   : > { %v960_v48 = vadd.f32 %v959_v53, %v958_v4 }
  0xb9   : > { %v962_v6 = vadd.f32 %v961_v1, %v960_v48 }
  0xbb   : > { %v964_v7 = vadd.f32 %v963_v5, %v962_v6 }
  0xbd   : > { %965 = vadd.xlane.f32.xlu1 %v964_v7 }
 0x113   : > { %v982_v14 = vpop.permute.xlu0 %981 }
 0x114   : > { %vm983_vm2 = vcmp.lt.s32.totalorder %v1956_v62, %v982_v14 }
 0x115   : > { %v1257_v32 = vsel %vm983_vm2, 1.0, %v1519_v25 }
 0x116   : > { %vm986_vm3 = vcmp.gt.f32.partialorder %v1257_v32, 0.0 }
 0x117   : > { %v987_v28 = vsel %vm986_vm3, %v976_v24, 0.0 }
 0x118   : > { %v988_v31 = vadd.f32 1.0, %v987_v28 }
 0x119   : > { %v1009_v29 = vpop.permute.xlu0 %1008 }
 0x11a   : > { %vm1010_vm4 = vcmp.lt.s32.totalorder %v1956_v62, %v1009_v29  ;;  %vm1011_vm5 = vcmp.lt.s32.totalorder %v1005_v16, %v1009_v29  ;;  %1402 = vlog2.f32 %v988_v31 }
 0x11b   : > { %v1258_v19 = vsel %vm1010_vm4, 1.0, %v1519_v25  ;;  %v1259_v63 = vsel %vm1011_vm5, 1.0, %v1519_v25 }
 0x11c   : > { %v1036_v34 = vmul.f32 %v1258_v19, %v1032_v21  ;;  %v1037_v35 = vmul.f32 %v1259_v63, %v1033_v23  ;;  %v1064_v43 = vmul.f32 %v1258_v19, %v1060_v38  ;;  %v1065_v44 = vmul.f32 %v1259_v63, %v1061_v20 }
 0x11e   : > { %v1038_v37 = vmul.f32 %v1036_v34, %v1032_v21  ;;  %v1039_v3 = vmul.f32 %v1037_v35, %v1033_v23  ;;  %v1066_v26 = vmul.f32 %v1064_v43, %v1060_v38  ;;  %v1067_v46 = vmul.f32 %v1065_v44, %v1061_v20 }
 0x120   : > { %v1041_v39 = vsel %vm1040_vm6, %v1038_v37, 0.0  ;;  %v1042_v30 = vsel %vm1040_vm6, %v1039_v3, 0.0  ;;  %v1068_v42 = vsel %vm1040_vm6, %v1066_v26, 0.0  ;;  %v1069_v22 = vsel %vm1040_vm6, %v1067_v46, 0.0 }
 0x121   : > { %v1043_v49 = vadd.f32 %v1042_v30, %v1041_v39  ;;  %v1070_v55 = vadd.f32 %v1069_v22, %v1068_v42 }
 0x123   : > { %1044 = vadd.xlane.f32.xlu0 %v1043_v49 }
 0x124   : > { %v1403_v10 = vpop.eup %1402 }
 0x125   : > { %v990_v41 = vmul.f32 0.6931472, %v1403_v10 }
 0x127   : > { %v991_v45 = vsub.f32 %v974_v40, %v990_v41 }
 0x129   : > { %v992_v36 = vmul.f32 %v1257_v32, %v991_v45 }
 0x12b   : > { %v993_v47 = vmul.f32 %v992_v36, %v991_v45 }
 0x12d   : > { %v995_v51 = vsel %vm994_vm7, %v993_v47, 0.0 }
 0x12e   : > { %996 = vadd.xlane.f32.xlu1 %v995_v51 }
 0x132   : > { %1071 = vadd.xlane.f32.xlu1 %v1070_v55 }
 0x14a   : > { %v966_v52 = vpop.xlane.xlu1 %965 }
 0x14b   : > { %v967_v54 = vrot.slane %v966_v52, 4 }
 0x14d   : > { %v968_v56 = vadd.f32 %v967_v54, %v966_v52 }
 0x14f   : > { %v969_v57 = vrot.slane %v968_v56, 2 }
 0x151   : > { %v970_v60 = vadd.f32 %v969_v57, %v968_v56 }
 0x153   : > { %v971_v58 = vrot.slane %v970_v60, 1 }
 0x155   : > { %v972_v61 = vadd.f32 %v971_v58, %v970_v60 }
 0x157   : > { %1270 = vpush %v972_v61 }
 0x188   : > { %s1271_s24 = spop %1270 }
 0x189   : > { %v1081_v16 = vstv %s1271_s24 }
 0x18a   : > { %v1082_v32 = vsel %vm1080_vm8, %v1081_v16, 0.0 }
 0x1b0   : > { %v1045_v53 = vpop.xlane.xlu0 %1044 }
 0x1b1   : > { %v1046_v2 = vrot.slane %v1045_v53, 4 }
 0x1b3   : > { %v1047_v4 = vadd.f32 %v1046_v2, %v1045_v53 }
 0x1b5   : > { %v1048_v1 = vrot.slane %v1047_v4, 2 }
 0x1b7   : > { %v1049_v7 = vadd.f32 %v1048_v1, %v1047_v4 }
 0x1b9   : > { %v1050_v13 = vrot.slane %v1049_v7, 1 }
 0x1bb   : > { %v997_v48 = vpop.xlane.xlu1 %996  ;;  %v1051_v21 = vadd.f32 %v1050_v13, %v1049_v7 }
 0x1bc   : > { %v998_v5 = vrot.slane %v997_v48, 4 }
 0x1be   : > { %v999_v6 = vadd.f32 %v998_v5, %v997_v48 }
 0x1bf   : > { %v1072_v59 = vpop.xlane.xlu1 %1071 }
 0x1c0   : > { %v1000_v8 = vrot.slane %v999_v6, 2  ;;  %v1073_v50 = vrot.slane %v1072_v59, 4 }
 0x1c2   : > { %v1074_v11 = vadd.f32 %v1073_v50, %v1072_v59  ;;  %v1001_v12 = vadd.f32 %v1000_v8, %v999_v6 }
 0x1c4   : > { %v1075_v0 = vrot.slane %v1074_v11, 2  ;;  %v1002_v17 = vrot.slane %v1001_v12, 1 }
 0x1c6   : > { %v1076_v9 = vadd.f32 %v1075_v0, %v1074_v11  ;;  %v1003_v18 = vadd.f32 %v1002_v17, %v1001_v12 }
 0x1c8   : > { %1272 = vpush %v1003_v18  ;;  %v1077_v14 = vrot.slane %v1076_v9, 1 }
 0x1c9   : > { %1274 = vpush %v1051_v21 }
 0x1ca   : > { %v1078_v24 = vadd.f32 %v1077_v14, %v1076_v9 }
 0x1cc   : > { %1276 = vpush %v1078_v24 }
 0x1f9   : > { %s1273_s30 = spop %1272 }
 0x1fa   : > { %v1084_v25 = vstv %s1273_s30  ;;  %s1275_s16 = spop %1274 }
 0x1fb   : > { %v1085_v15 = vsel %vm1083_vm9, %v1084_v25, 0.0  ;;  %v1088_v27 = vstv %s1275_s16 }
 0x1fc   : > { %v1086_v23 = vadd.f32 %v1085_v15, %v1082_v32  ;;  %v1089_v28 = vsel %vm1087_vm10, %v1088_v27, 0.0 }
 0x1fd   : > { %s1277_s23 = spop %1276 }
 0x1fe   : > { %v1090_v29 = vadd.f32 %v1089_v28, %v1086_v23  ;;  %v1092_v31 = vstv %s1277_s23 }
 0x1ff   : > { %v1093_v33 = vsel %vm1091_vm11, %v1092_v31, 0.0 }
 0x200   : > { %v1094_v19 = vadd.f32 %v1093_v33, %v1090_v29 }
 0x202   : > { %1095 = vst [vmem:[%s658_s25] sm:$0xff] %v1094_v19 }
 0x203 PF: > { %s2066_s20 = sld [smem:[#allocation9_spill]]  ;;  %s2067_s15 = sld [smem:[#allocation15_spill]] }
 0x204   : > { %s1110_s30 = sshll.u32 %s658_s25, 4  ;;  %s1097_s16 = scalar_lea.sflag [#allocation7], %s656_s22  ;;  %s1111_s30 = int_to_ptr.vmem [resolvable:$true] %s1110_s30 }
 0x205   : > { %s1404_s23 = scalar_lea.vmem %s1111_s30, 128  ;;  %s1520_s0 = smov [#allocation6]  }
 0x206   : > { %p1405_p5 = scmp.ne.s32.totalorder %s1111_s30, %s1404_s23  ;;  %s1408_s1 = sshll.u32 %s1520_s0, 4  ;;  %s1409_s1 = int_to_ptr.vmem [resolvable:$false] %s1408_s1 }
 0x207   : > { %s1410_s2 = scalar_lea.vmem %s1409_s1, 256  ;;  %p1411_p8 = scmp.lt.s32.totalorder %s1111_s30, %s1409_s1 }
 0x208   : > { %p1406_p6 = pnand %p1405_p5, %p1647_p9  ;;  %p1412_p10 = scmp.lt.s32.totalorder %s1410_s2, %s1404_s23 }
 0x209   : > { %s1264_s10 = sshll.u32 %s2066_s20, 7 }
 0x20a   : > { %s1984_s24 = scalar_lea.hbm %s2067_s15, %s1264_s10  ;;  %p1407_p7 = pneg %p1406_p6 }
 0x20b   : > { %p1413_p11 = por %p1412_p10, %p1411_p8 }
 0x20d   : > { %p1414_p13 = pnand %p1413_p11, %p1407_p7 }
 0x20f   : > { %1417 = shalt.err (!%p1414_p13)
}
 0x210   : > { %s1418_s22 = scalar_lea.hbm %s1984_s24, 128  ;;  %s1422_s0 = scalar_lea.hbm %s2067_s15, 256 }
 0x211   : > { %p1419_p0 = scmp.ne.s32.totalorder %s1984_s24, %s1418_s22  ;;  %p1423_p3 = scmp.lt.u32.totalorder %s1984_s24, %s2067_s15 }
 0x212   : > { %p1424_p4 = scmp.lt.u32.totalorder %s1422_s0, %s1418_s22  ;;  %p1426_p6 = scmp.lt.u32.totalorder %s1418_s22, %s1984_s24 }
 0x213   : > { %p1420_p1 = pnand %p1419_p0, %p1647_p9 }
 0x214   : > { %p1425_p5 = por %p1424_p4, %p1423_p3 }
 0x215   : > { %p1421_p2 = pneg %p1420_p1 }
 0x216   : > { %p1427_p7 = por %p1426_p6, %p1425_p5 }
 0x218   : > { %p1428_p8 = pnand %p1427_p7, %p1421_p2 }
 0x21a   : > { %1431 = shalt.err (!%p1428_p8)
}
 0x21b   : > { %1278 = dma.vmem_to_hbm [thread:$0]  (%p1647_p9), %s1111_s30, 128, %s1984_s24, %s1097_s16  }
 0x21c PF: > { %p1284_p10 = scmp.ge.s32.totalorder %s1514_s14, 2  ;;  %s1122_s2 = sand.u32 1, %s1478_s27  }
 0x21d   : > { %s1123_s10 = scalar_lea.sflag [#allocation7], %s1122_s2 }
 0x21e   : > { %p1281_p11 = pnand %p1284_p10, %p1657_p12 }
 0x220   : > { %1473 = dma.done.wait (!%p1281_p11), %s1123_s10, 128  }
 0x221   : > { %1475 = vsyncadd (!%p1281_p11), %s1123_s10, 4294967168  ;;  %s21_s14 = sadd.s32 1, %s1514_s14   ;;  %s2068_s10 = sld [smem:[#allocation10_spill]] }
 0x222   : > { %p18_p13 = scmp.ge.s32.totalorder %s21_s14, 6   ;;  %s2069_s27 = smov %s1482_s28 }
 0x223   : > { %s2070_s28 = smov %s1486_s29  ;;  %s2071_s29 = smov %s1652_s8 }
 0x224   : > { %s2072_s30 = smov %s1494_s9  ;;  %s2073_s9 = smov %s1655_s11 }
 0x225   : > { %s2074_s11 = smov %s1510_s13  ;;  %s2075_s12 = smov %s2078_s17 }
 0x226   : > { %s2076_s13 = smov %s2082_s18  ;;  %20 = sbr.rel (!%p18_p13) target bundleno = 12 (0xc), region = 233 }
 0x22d   :  { %1128 = vsyncpa [#allocation7], 1 }
 0x22e   :  { %1130 = vsyncpa [#allocation7 + $0x1], 1 }

</bundles_post_ra>
